<compile_context>
chip_gen: v7x
topology: tpu7x:2x2x1
jax: 0.10.0
libtpu: 0.0.40
codegen_flags: <defaults>
</compile_context>

<pallas_src>
import jax
import jax.numpy as jnp
from jax.experimental import pallas as pl
from jax.experimental.pallas import tpu as pltpu

INPUT_DIM = 17
HID1 = 128
HID2 = 64
OUTPUT_DIM = 6          # len(ACTIONS)

HID2_PAD = 128          # lane-dense padded hidden2
OUT_PAD = 128           # lane-dense padded output
DEFAULT_TILE_B = 256    # batch tile (multiple of 8 sublanes; fills 256-wide MXU rows)


def qnet_kernel(x_ref, w1_ref, b1_ref, w2_ref, b2_ref, w3_ref, b3_ref, o_ref):
    # One batch tile per grid step; all three matmuls fused, intermediates in
    # vregs/VMEM only. Biases loaded once per tile (broadcast hoisted).
    x = x_ref[...]
    b1 = b1_ref[...]
    b2 = b2_ref[...]
    b3 = b3_ref[...]
    h1 = jnp.dot(x, w1_ref[...], preferred_element_type=jnp.float32) + b1
    h1 = jnp.maximum(h1, 0.0)
    h2 = jnp.dot(h1, w2_ref[...], preferred_element_type=jnp.float32) + b2
    h2 = jnp.maximum(h2, 0.0)
    o_ref[...] = jnp.dot(h2, w3_ref[...], preferred_element_type=jnp.float32) + b3


def _pad_params(params):
    """Zero-pad weights/biases to lane-dense (128) widths.

    Padded hidden2 columns get zero weight + zero bias -> relu(0)=0, and the
    corresponding padded w3 rows are zero, so results are bit-identical on the
    first OUTPUT_DIM output lanes.
    """
    w1, b1, w2, b2, w3, b3 = params
    w2p = jnp.pad(w2, ((0, 0), (0, HID2_PAD - HID2)))
    b2p = jnp.pad(b2, ((0, 0), (0, HID2_PAD - HID2)))
    w3p = jnp.pad(w3, ((0, HID2_PAD - HID2), (0, OUT_PAD - OUTPUT_DIM)))
    b3p = jnp.pad(b3, ((0, 0), (0, OUT_PAD - OUTPUT_DIM)))
    return w1, b1, w2p, b2p, w3p, b3p


def qnetwork_forward(x, params, tile_b=DEFAULT_TILE_B):
    """x: (B, 17) float32 -> (B, 6) float32 Q-values."""
    B = x.shape[0]
    # Sublane-aligned batch tile, capped at tile_b; pad batch to a multiple.
    tb = min(tile_b, max(8, ((B + 7) // 8) * 8))
    n_tiles = pl.cdiv(B, tb)
    b_pad = n_tiles * tb
    if b_pad != B:
        x = jnp.pad(x, ((0, b_pad - B), (0, 0)))

    w1, b1, w2, b2, w3, b3 = _pad_params(params)

    def const_spec(shape):
        # Weights/biases: same block every grid step -> stay resident in VMEM.
        return pl.BlockSpec(shape, lambda i: (0, 0))

    out_padded = pl.pallas_call(
        qnet_kernel,
        out_shape=jax.ShapeDtypeStruct((b_pad, OUT_PAD), jnp.float32),
        grid=(n_tiles,),
        in_specs=[
            pl.BlockSpec((tb, INPUT_DIM), lambda i: (i, 0)),   # x: batch-tiled
            const_spec((INPUT_DIM, HID1)),
            const_spec((1, HID1)),
            const_spec((HID1, HID2_PAD)),
            const_spec((1, HID2_PAD)),
            const_spec((HID2_PAD, OUT_PAD)),
            const_spec((1, OUT_PAD)),
        ],
        out_specs=pl.BlockSpec((tb, OUT_PAD), lambda i: (i, 0)),
        compiler_params=pltpu.CompilerParams(
            dimension_semantics=("parallel",),
        ),
    )(x, w1, b1, w2, b2, w3, b3)

    return out_padded[:B, :OUTPUT_DIM]


def init_params(key):
    """Deterministic init mimicking PyTorch Linear default (uniform +/- 1/sqrt(fan_in))."""
    keys = jax.random.split(key, 6)

    def linear(kw, kb, fan_in, fan_out):
        bound = 1.0 / jnp.sqrt(jnp.float32(fan_in))
        w = jax.random.uniform(kw, (fan_in, fan_out), jnp.float32, -bound, bound)
        b = jax.random.uniform(kb, (1, fan_out), jnp.float32, -bound, bound)
        return w, b

    w1, b1 = linear(keys[0], keys[1], INPUT_DIM, HID1)
    w2, b2 = linear(keys[2], keys[3], HID1, HID2)
    w3, b3 = linear(keys[4], keys[5], HID2, OUTPUT_DIM)
    return (w1, b1, w2, b2, w3, b3)


def reference_forward(x, params):
    w1, b1, w2, b2, w3, b3 = params
    h1 = jnp.maximum(x @ w1 + b1, 0.0)
    h2 = jnp.maximum(h1 @ w2 + b2, 0.0)
    return h2 @ w3 + b3


if __name__ == "__main__":
    key = jax.random.PRNGKey(0)
    k_params, k_x1, k_x2 = jax.random.split(key, 3)

    params = init_params(k_params)

    # Small batch (single tile, tb shrinks to 8).
    B_small = 8
    x_small = jax.random.normal(k_x1, (B_small, INPUT_DIM), dtype=jnp.float32)
    out_small = jax.block_until_ready(qnetwork_forward(x_small, params))
    ref_small = reference_forward(x_small, params)
    assert out_small.shape == (B_small, OUTPUT_DIM)
    assert jnp.allclose(out_small, ref_small, atol=1e-4, rtol=1e-4)

    # Larger ragged batch (multiple grid steps + batch padding/slicing path).
    B_big = 300
    x_big = jax.random.normal(k_x2, (B_big, INPUT_DIM), dtype=jnp.float32)
    out_big = jax.block_until_ready(qnetwork_forward(x_big, params))
    ref_big = reference_forward(x_big, params)
    assert out_big.shape == (B_big, OUTPUT_DIM)
    assert jnp.allclose(out_big, ref_big, atol=1e-4, rtol=1e-4)

    print("KERNEL_OK")
</pallas_src>

<mosaic_0001>
module attributes {stable_mosaic.version = 11 : i64} {
  func.func @qnet_kernel(%arg0: i32, %arg1: memref<8x17xf32, #tpu.memory_space<vmem>>, %arg2: memref<17x128xf32, #tpu.memory_space<vmem>>, %arg3: memref<1x128xf32, #tpu.memory_space<vmem>>, %arg4: memref<128x128xf32, #tpu.memory_space<vmem>>, %arg5: memref<1x128xf32, #tpu.memory_space<vmem>>, %arg6: memref<128x128xf32, #tpu.memory_space<vmem>>, %arg7: memref<1x128xf32, #tpu.memory_space<vmem>>, %arg8: memref<8x128xf32, #tpu.memory_space<vmem>>) attributes {dimension_semantics = [#tpu.dimension_semantics<parallel>], iteration_bounds = array<i64: 1>, scalar_prefetch = 0 : i64, scratch_operands = 0 : i64, tpu.core_type = #tpu.core_type<tc>, window_params = [{transform_indices = @transform_0, window_bounds = array<i64: 8, 17>}, {pipeline_mode = #tpu.pipeline_mode<synchronous>, transform_indices = @transform_1, window_bounds = array<i64: 17, 128>}, {pipeline_mode = #tpu.pipeline_mode<synchronous>, transform_indices = @transform_2, window_bounds = array<i64: 1, 128>}, {pipeline_mode = #tpu.pipeline_mode<synchronous>, transform_indices = @transform_3, window_bounds = array<i64: 128, 128>}, {pipeline_mode = #tpu.pipeline_mode<synchronous>, transform_indices = @transform_4, window_bounds = array<i64: 1, 128>}, {pipeline_mode = #tpu.pipeline_mode<synchronous>, transform_indices = @transform_5, window_bounds = array<i64: 128, 128>}, {pipeline_mode = #tpu.pipeline_mode<synchronous>, transform_indices = @transform_6, window_bounds = array<i64: 1, 128>}, {transform_indices = @transform_7, window_bounds = array<i64: 8, 128>}]} {
    %c0 = arith.constant 0 : index
    %c0_0 = arith.constant 0 : index
    %0 = vector.load %arg1[%c0, %c0_0] : memref<8x17xf32, #tpu.memory_space<vmem>>, vector<8x17xf32>
    %c0_1 = arith.constant 0 : index
    %c0_2 = arith.constant 0 : index
    %1 = vector.load %arg3[%c0_1, %c0_2] : memref<1x128xf32, #tpu.memory_space<vmem>>, vector<1x128xf32>
    %c0_3 = arith.constant 0 : index
    %c0_4 = arith.constant 0 : index
    %2 = vector.load %arg5[%c0_3, %c0_4] : memref<1x128xf32, #tpu.memory_space<vmem>>, vector<1x128xf32>
    %c0_5 = arith.constant 0 : index
    %c0_6 = arith.constant 0 : index
    %3 = vector.load %arg7[%c0_5, %c0_6] : memref<1x128xf32, #tpu.memory_space<vmem>>, vector<1x128xf32>
    %c0_7 = arith.constant 0 : index
    %c0_8 = arith.constant 0 : index
    %4 = vector.load %arg2[%c0_7, %c0_8] : memref<17x128xf32, #tpu.memory_space<vmem>>, vector<17x128xf32>
    %cst = arith.constant dense<0.000000e+00> : vector<8x128xf32>
    %5 = tpu.matmul %0, %4, %cst {dimension_numbers = #tpu.dot_dimension_numbers<[1], [0], [0], [1], [0, 0, 1, 1], [], []>} : vector<8x17xf32>, vector<17x128xf32>, vector<8x128xf32> -> vector<8x128xf32>
    %6 = vector.broadcast %1 : vector<1x128xf32> to vector<8x128xf32>
    %7 = arith.addf %5, %6 : vector<8x128xf32>
    %cst_9 = arith.constant 0.000000e+00 : f32
    %8 = vector.broadcast %cst_9 : f32 to vector<8x128xf32>
    %9 = arith.maximumf %7, %8 : vector<8x128xf32>
    %c0_10 = arith.constant 0 : index
    %c0_11 = arith.constant 0 : index
    %10 = vector.load %arg4[%c0_10, %c0_11] : memref<128x128xf32, #tpu.memory_space<vmem>>, vector<128x128xf32>
    %cst_12 = arith.constant dense<0.000000e+00> : vector<8x128xf32>
    %11 = tpu.matmul %9, %10, %cst_12 {dimension_numbers = #tpu.dot_dimension_numbers<[1], [0], [0], [1], [0, 0, 1, 1], [], []>} : vector<8x128xf32>, vector<128x128xf32>, vector<8x128xf32> -> vector<8x128xf32>
    %12 = vector.broadcast %2 : vector<1x128xf32> to vector<8x128xf32>
    %13 = arith.addf %11, %12 : vector<8x128xf32>
    %cst_13 = arith.constant 0.000000e+00 : f32
    %14 = vector.broadcast %cst_13 : f32 to vector<8x128xf32>
    %15 = arith.maximumf %13, %14 : vector<8x128xf32>
    %c0_14 = arith.constant 0 : index
    %c0_15 = arith.constant 0 : index
    %16 = vector.load %arg6[%c0_14, %c0_15] : memref<128x128xf32, #tpu.memory_space<vmem>>, vector<128x128xf32>
    %cst_16 = arith.constant dense<0.000000e+00> : vector<8x128xf32>
    %17 = tpu.matmul %15, %16, %cst_16 {dimension_numbers = #tpu.dot_dimension_numbers<[1], [0], [0], [1], [0, 0, 1, 1], [], []>} : vector<8x128xf32>, vector<128x128xf32>, vector<8x128xf32> -> vector<8x128xf32>
    %18 = vector.broadcast %3 : vector<1x128xf32> to vector<8x128xf32>
    %19 = arith.addf %17, %18 : vector<8x128xf32>
    %c0_17 = arith.constant 0 : index
    %c0_18 = arith.constant 0 : index
    %20 = vector.load %arg8[%c0_17, %c0_18] : memref<8x128xf32, #tpu.memory_space<vmem>>, vector<8x128xf32>
    tpu.vector_store %arg8[%c0_17, %c0_18], %19 {strides = array<i32>} : memref<8x128xf32, #tpu.memory_space<vmem>>, vector<8x128xf32>,
    return
  }
  func.func @transform_0(%arg0: i32) -> (i32, i32) {
    %c0_i32 = arith.constant 0 : i32
    %c0_i32_0 = arith.constant 0 : i32
    return %arg0, %c0_i32 : i32, i32
  }
  func.func @transform_1(%arg0: i32) -> (i32, i32) {
    %c0_i32 = arith.constant 0 : i32
    %c0_i32_0 = arith.constant 0 : i32
    %c0_i32_1 = arith.constant 0 : i32
    return %c0_i32, %c0_i32_0 : i32, i32
  }
  func.func @transform_2(%arg0: i32) -> (i32, i32) {
    %c0_i32 = arith.constant 0 : i32
    %c0_i32_0 = arith.constant 0 : i32
    %c0_i32_1 = arith.constant 0 : i32
    return %c0_i32, %c0_i32_0 : i32, i32
  }
  func.func @transform_3(%arg0: i32) -> (i32, i32) {
    %c0_i32 = arith.constant 0 : i32
    %c0_i32_0 = arith.constant 0 : i32
    %c0_i32_1 = arith.constant 0 : i32
    return %c0_i32, %c0_i32_0 : i32, i32
  }
  func.func @transform_4(%arg0: i32) -> (i32, i32) {
    %c0_i32 = arith.constant 0 : i32
    %c0_i32_0 = arith.constant 0 : i32
    %c0_i32_1 = arith.constant 0 : i32
    return %c0_i32, %c0_i32_0 : i32, i32
  }
  func.func @transform_5(%arg0: i32) -> (i32, i32) {
    %c0_i32 = arith.constant 0 : i32
    %c0_i32_0 = arith.constant 0 : i32
    %c0_i32_1 = arith.constant 0 : i32
    return %c0_i32, %c0_i32_0 : i32, i32
  }
  func.func @transform_6(%arg0: i32) -> (i32, i32) {
    %c0_i32 = arith.constant 0 : i32
    %c0_i32_0 = arith.constant 0 : i32
    %c0_i32_1 = arith.constant 0 : i32
    return %c0_i32, %c0_i32_0 : i32, i32
  }
  func.func @transform_7(%arg0: i32) -> (i32, i32) {
    %c0_i32 = arith.constant 0 : i32
    %c0_i32_0 = arith.constant 0 : i32
    return %arg0, %c0_i32 : i32, i32
  }
}

</mosaic_0001>

<bundles_post_ra>
// kernel: tpu_custom_call.1
= control target key start
LH: loop header
LB: loop body
LE: loop exit
PB: predicated region body
PF: predicated region fallthrough
CT: control target
= control target key end

     0   :  { %12 = vsyncpa [#allocation3], 0  ;;  %s824_s0 = inlined_call_operand.hbm [shape: f32[8,17], index: 0, kind: input, shape index: {}]   ;;  %s825_s1 = inlined_call_operand.hbm [shape: f32[17,128], index: 1, kind: input, shape index: {}]   ;;  %s826_s2 = inlined_call_operand.vmem [shape: f32[1,128], index: 2, kind: input, shape index: {}]   ;;  %s827_s3 = inlined_call_operand.hbm [shape: f32[128,128], index: 3, kind: input, shape index: {}]   ;;  %s828_s4 = inlined_call_operand.vmem [shape: f32[1,128], index: 4, kind: input, shape index: {}]   ;;  %s829_s5 = inlined_call_operand.hbm [shape: f32[128,128], index: 5, kind: input, shape index: {}]   ;;  %s830_s6 = inlined_call_operand.vmem [shape: f32[1,128], index: 6, kind: input, shape index: {}]   ;;  %s831_s7 = inlined_call_operand.hbm [shape: f32[8,128], index: 7, kind: output, shape index: {}]  }
   0x1   :  { %13 = vsyncpa [#allocation6], 0 }
   0x2   :  { %14 = vsyncpa [#allocation9], 0 }
   0x3   :  { %15 = vsyncpa [#allocation4], 0  ;;  %s676_s24 = smov [#allocation5]   ;;  %s558_s28 = scalar_lea.hbm %s825_s1, 384 }
   0x4   :  { %s31_s25 = sshll.u32 %s676_s24, 4  ;;  %p559_p0 = scmp.ne.s32.totalorder %s825_s1, %s558_s28  ;;  %s32_s25 = int_to_ptr.vmem [resolvable:$true] %s31_s25 }
   0x5   :  { %p562_p1 = scmp.lt.u32.totalorder %s558_s28, %s825_s1 }
   0x7   :  { %p564_p2 = pnand %p562_p1, %p559_p0 }
   0x9   :  { %567 = shalt.err (!%p564_p2)
}
   0xa   :  { %s568_s10 = scalar_lea.vmem %s32_s25, 384  ;;  %p573_p4 = scmp.lt.s32.totalorder %s32_s25, %s32_s25 }
   0xb   :  { %p569_p3 = scmp.ne.s32.totalorder %s32_s25, %s568_s10  ;;  %p574_p5 = scmp.lt.s32.totalorder %s568_s10, %s568_s10 }
   0xd   :  { %p575_p6 = por %p574_p5, %p573_p4 }
   0xf   :  { %p576_p7 = pnand %p575_p6, %p569_p3 }
  0x11   :  { %579 = shalt.err (!%p576_p7)
}
  0x12   :  { %s677_s11 = smov 128   ;;  %s678_s12 = smov 8  }
  0x13   :  { %37 = dma.hbm_to_vmem [thread:$0]  %s825_s1, 384, %s32_s25, [#allocation6], %s677_s11, %s677_s11, %s678_s12  }
  0x14   :  { %s679_s15 = smov [#allocation2]   ;;  %s680_s17 = smov [#allocation7]  }
  0x15   :  { %s22_s16 = sshll.u32 %s679_s15, 4  ;;  %s45_s18 = sshll.u32 %s680_s17, 4  ;;  %s23_s16 = int_to_ptr.vmem [resolvable:$true] %s22_s16  ;;  %s46_s18 = int_to_ptr.vmem [resolvable:$true] %s45_s18 }
  0x16   :  { %s580_s21 = scalar_lea.hbm %s824_s0, 128 }
  0x17   :  { %p581_p8 = scmp.ne.s32.totalorder %s824_s0, %s580_s21  ;;  %p584_p9 = scmp.lt.u32.totalorder %s580_s21, %s824_s0 }
  0x19   :  { %p586_p10 = pnand %p584_p9, %p581_p8 }
  0x1b   :  { %589 = shalt.err (!%p586_p10)
}
  0x1c   :  { %s590_s1 = scalar_lea.vmem %s23_s16, 128  ;;  %p595_p12 = scmp.lt.s32.totalorder %s23_s16, %s23_s16 }
  0x1d   :  { %p591_p11 = scmp.ne.s32.totalorder %s23_s16, %s590_s1  ;;  %p596_p13 = scmp.lt.s32.totalorder %s590_s1, %s590_s1 }
  0x1f   :  { %p597_p0 = por %p596_p13, %p595_p12 }
  0x21   :  { %p598_p1 = pnand %p597_p0, %p591_p11 }
  0x23   :  { %601 = shalt.err (!%p598_p1)
}
  0x24   :  { %25 = dma.hbm_to_vmem [thread:$0]  %s824_s0, 128, %s23_s16, [#allocation3]  }
  0x25   :  { %s602_s30 = scalar_lea.hbm %s827_s3, 2048 }
  0x26   :  { %p603_p2 = scmp.ne.s32.totalorder %s827_s3, %s602_s30  ;;  %p606_p3 = scmp.lt.u32.totalorder %s602_s30, %s827_s3 }
  0x28   :  { %p608_p4 = pnand %p606_p3, %p603_p2 }
  0x2a   :  { %611 = shalt.err (!%p608_p4)
}
  0x2b   :  { %s612_s14 = scalar_lea.vmem %s46_s18, 2048  ;;  %p617_p6 = scmp.lt.s32.totalorder %s46_s18, %s46_s18 }
  0x2c   :  { %p613_p5 = scmp.ne.s32.totalorder %s46_s18, %s612_s14  ;;  %p618_p7 = scmp.lt.s32.totalorder %s612_s14, %s612_s14 }
  0x2e   :  { %p619_p8 = por %p618_p7, %p617_p6 }
  0x30   :  { %p620_p9 = pnand %p619_p8, %p613_p5 }
  0x32   :  { %623 = shalt.err (!%p620_p9)
}
  0x33   :  { %51 = dma.hbm_to_vmem [thread:$0]  %s827_s3, 2048, %s46_s18, [#allocation6], %s677_s11, %s677_s11, %s678_s12  }
  0x34   :  { %s681_s16 = smov [#allocation8]   ;;  %s624_s21 = scalar_lea.hbm %s829_s5, 2048 }
  0x35   :  { %s59_s17 = sshll.u32 %s681_s16, 4  ;;  %p625_p10 = scmp.ne.s32.totalorder %s829_s5, %s624_s21  ;;  %s60_s17 = int_to_ptr.vmem [resolvable:$true] %s59_s17 }
  0x36   :  { %p628_p11 = scmp.lt.u32.totalorder %s624_s21, %s829_s5 }
  0x38   :  { %p630_p12 = pnand %p628_p11, %p625_p10 }
  0x3a   :  { %633 = shalt.err (!%p630_p12)
}
  0x3b   :  { %s634_s1 = scalar_lea.vmem %s60_s17, 2048  ;;  %p639_p0 = scmp.lt.s32.totalorder %s60_s17, %s60_s17 }
  0x3c   :  { %p635_p13 = scmp.ne.s32.totalorder %s60_s17, %s634_s1  ;;  %p640_p1 = scmp.lt.s32.totalorder %s634_s1, %s634_s1 }
  0x3e   :  { %p641_p2 = por %p640_p1, %p639_p0 }
  0x40   :  { %p642_p3 = pnand %p641_p2, %p635_p13 }
  0x42   :  { %645 = shalt.err (!%p642_p3)
}
  0x43   :  { %65 = dma.hbm_to_vmem [thread:$0]  %s829_s5, 2048, %s60_s17, [#allocation9], %s677_s11, %s677_s11, %s678_s12  }
  0x44   :  { %668 = dma.done.wait [#allocation3], 128  }
  0x45   :  { %669 = vsyncadd [#allocation3], 4294967168 }
  0x46   :  { %670 = dma.done.wait [#allocation6], 2432  }
  0x47   :  { %671 = vsyncadd [#allocation6], 4294964864 }
  0x48   :  { %672 = dma.done.wait [#allocation9], 2048  }
  0x49   :  { %673 = vsyncadd [#allocation9], 4294965248  ;;  %v682_v0 = vmov 0.0|0.0   ;;  %vm683_vm0 = vmmov 0   ;;  %v684_v1 = vmov 0.0   ;;  %v84_v2 = vld [vmem:[#allocation5] sm:$0xff] }
  0x4a   :  { %497 = vmatprep.subr.bf16.mxu0 %v682_v0  ;;  %424 = vmatprep.mubr.msk.f32.mxu0 %vm683_vm0, %v684_v1  ;;  %v85_v3 = vld [vmem:[#allocation5 + $0x8] sm:$0xff]  ;;  %v172_v5 = vld [vmem:[#allocation7] sm:$0xff]  ;;  %v173_v6 = vld [vmem:[#allocation7 + $0x8] sm:$0xff]  ;;  %vm97_vm1 = vcmask 1040384   ;;  %vm93_vm2 = vcmask 138240   ;;  %s685_s28 = smov [#allocation10]  }
  0x4b   :  { %500 = vmatprep.subr.bf16.mxu1 %v682_v0  ;;  %459 = vmatprep.mubr.msk.f32.mxu1 %vm683_vm0, %v684_v1  ;;  %v498_v4 = vpack.c.bf16 %v85_v3, %v84_v2  ;;  %v501_v7 = vpack.c.bf16 %v173_v6, %v172_v5  ;;  %v174_v8 = vld [vmem:[#allocation7 + $0x10] sm:$0xff]  ;;  %v175_v9 = vld [vmem:[#allocation7 + $0x18] sm:$0xff]  ;;  %v80_v12 = vld [vmem:[#allocation2] sm:$0xff]  ;;  %s364_s29 = sshll.u32 %s685_s28, 4  ;;  %s365_s29 = int_to_ptr.vmem [resolvable:$true] %s364_s29 }
  0x4c   :  { %v86_v10 = vld [vmem:[#allocation5 + $0x10] sm:$0x1]  ;;  %v504_v11 = vpack.c.bf16 %v175_v9, %v174_v8  ;;  %v176_v13 = vld [vmem:[#allocation7 + $0x20] sm:$0xff]  ;;  %v177_v14 = vld [vmem:[#allocation7 + $0x28] sm:$0xff]  ;;  %s646_s30 = scalar_lea.vmem %s365_s29, 128  ;;  %p651_p5 = scmp.lt.s32.totalorder %s365_s29, %s365_s29 }
  0x4d   :  { %499 = vmatpush3.bf16.msra.mxu0 %v498_v4  ;;  %502 = vmatpush3.bf16.msra.mxu1 %v501_v7  ;;  %v507_v15 = vpack.c.bf16 %v177_v14, %v176_v13  ;;  %v178_v16 = vld [vmem:[#allocation7 + $0x30] sm:$0xff]  ;;  %v179_v17 = vld [vmem:[#allocation7 + $0x38] sm:$0xff]  ;;  %v180_v19 = vld [vmem:[#allocation7 + $0x40] sm:$0xff]  ;;  %p647_p4 = scmp.ne.s32.totalorder %s365_s29, %s646_s30  ;;  %p652_p6 = scmp.lt.s32.totalorder %s646_s30, %s646_s30 }
  0x4e   :  { %422 = vmatprep.subr.mxu0 %v684_v1  ;;  %503 = vmatprep.subr.bf16.mxu1 %v682_v0  ;;  %v510_v18 = vpack.c.bf16 %v179_v17, %v178_v16  ;;  %v181_v20 = vld [vmem:[#allocation7 + $0x48] sm:$0xff]  ;;  %v182_v22 = vld [vmem:[#allocation7 + $0x50] sm:$0xff]  ;;  %v183_v23 = vld [vmem:[#allocation7 + $0x58] sm:$0xff] }
  0x4f   :  { %v513_v21 = vpack.c.bf16 %v181_v20, %v180_v19  ;;  %v516_v24 = vpack.c.bf16 %v183_v23, %v182_v22  ;;  %v184_v25 = vld [vmem:[#allocation7 + $0x60] sm:$0xff]  ;;  %v185_v26 = vld [vmem:[#allocation7 + $0x68] sm:$0xff]  ;;  %v186_v28 = vld [vmem:[#allocation7 + $0x70] sm:$0xff]  ;;  %p653_p7 = por %p652_p6, %p651_p5 }
  0x50   :  { %v519_v27 = vpack.c.bf16 %v185_v26, %v184_v25  ;;  %v187_v29 = vld [vmem:[#allocation7 + $0x78] sm:$0xff]  ;;  %v265_v31 = vld [vmem:[#allocation8] sm:$0xff]  ;;  %v266_v32 = vld [vmem:[#allocation8 + $0x8] sm:$0xff] }
  0x51   :  { %423 = vmatpush3.msk.msra.mxu0 %vm97_vm1, %v86_v10  ;;  %505 = vmatpush3.bf16.msra.mxu1 %v504_v11  ;;  %v522_v30 = vpack.c.bf16 %v187_v29, %v186_v28  ;;  %v267_v33 = vld [vmem:[#allocation8 + $0x10] sm:$0xff]  ;;  %v525_v34 = vpack.c.bf16 %v266_v32, %v265_v31  ;;  %v268_v35 = vld [vmem:[#allocation8 + $0x18] sm:$0xff]  ;;  %v269_v37 = vld [vmem:[#allocation8 + $0x20] sm:$0xff]  ;;  %p654_p8 = pnand %p653_p7, %p647_p4 }
  0x52   :  { %425 = vmatmul.mubr.msk.f32.vlgmr.msra.gmra.mrb[0].mxu0 %vm93_vm2, %v80_v12  ;;  %506 = vmatprep.subr.bf16.mxu1 %v682_v0  ;;  %v528_v36 = vpack.c.bf16 %v268_v35, %v267_v33  ;;  %v270_v38 = vld [vmem:[#allocation8 + $0x28] sm:$0xff]  ;;  %v271_v40 = vld [vmem:[#allocation8 + $0x30] sm:$0xff]  ;;  %v272_v41 = vld [vmem:[#allocation8 + $0x38] sm:$0xff] }
  0x53   :  { %524 = vmatprep.subr.bf16.mxu0 %v682_v0  ;;  %494 = vmatprep.mubr.msk.f32.mxu0 %vm683_vm0, %v684_v1  ;;  %v531_v39 = vpack.c.bf16 %v270_v38, %v269_v37  ;;  %v534_v42 = vpack.c.bf16 %v272_v41, %v271_v40  ;;  %v273_v43 = vld [vmem:[#allocation8 + $0x40] sm:$0xff]  ;;  %v274_v44 = vld [vmem:[#allocation8 + $0x48] sm:$0xff]  ;;  %v275_v46 = vld [vmem:[#allocation8 + $0x50] sm:$0xff] }
  0x54   :  { %526 = vmatpush3.bf16.msra.mxu0 %v525_v34  ;;  %v537_v45 = vpack.c.bf16 %v274_v44, %v273_v43  ;;  %v276_v47 = vld [vmem:[#allocation8 + $0x58] sm:$0xff]  ;;  %v277_v49 = vld [vmem:[#allocation8 + $0x60] sm:$0xff]  ;;  %v278_v50 = vld [vmem:[#allocation8 + $0x68] sm:$0xff] }
  0x55   :  { %508 = vmatpush3.bf16.msra.mxu1 %v507_v15  ;;  %527 = vmatprep.subr.bf16.mxu0 %v682_v0  ;;  %v540_v48 = vpack.c.bf16 %v276_v47, %v275_v46  ;;  %v543_v51 = vpack.c.bf16 %v278_v50, %v277_v49  ;;  %v375_v52 = vld [vmem:[%s826_s2] ss:$0 sm:$0xff]  ;;  %v279_v57 = vld [vmem:[#allocation8 + $0x70] sm:$0xff]  ;;  %v280_v58 = vld [vmem:[#allocation8 + $0x78] sm:$0xff] }
  0x56   :  { %509 = vmatprep.subr.bf16.mxu1 %v682_v0  ;;  %v546_v59 = vpack.c.bf16 %v280_v58, %v279_v57  ;;  %v378_v60 = vld [vmem:[%s828_s4] ss:$0 sm:$0xff] }
  0x57   :  { %v379_v1 = vld [vmem:[%s830_s6] ss:$0 sm:$0xff] }
  0x58   :  { %529 = vmatpush3.bf16.msra.mxu0 %v528_v36 }
  0x59   :  { %511 = vmatpush3.bf16.msra.mxu1 %v510_v18  ;;  %530 = vmatprep.subr.bf16.mxu0 %v682_v0 }
  0x5a   :  { %512 = vmatprep.subr.bf16.mxu1 %v682_v0 }
  0x5c   :  { %532 = vmatpush3.bf16.msra.mxu0 %v531_v39 }
  0x5d   :  { %514 = vmatpush3.bf16.msra.mxu1 %v513_v21  ;;  %533 = vmatprep.subr.bf16.mxu0 %v682_v0 }
  0x5e   :  { %515 = vmatprep.subr.bf16.mxu1 %v682_v0 }
  0x60   :  { %535 = vmatpush3.bf16.msra.mxu0 %v534_v42 }
  0x61   :  { %517 = vmatpush3.bf16.msra.mxu1 %v516_v24  ;;  %536 = vmatprep.subr.bf16.mxu0 %v682_v0 }
  0x62   :  { %518 = vmatprep.subr.bf16.mxu1 %v682_v0 }
  0x64   :  { %538 = vmatpush3.bf16.msra.mxu0 %v537_v45 }
  0x65   :  { %520 = vmatpush3.bf16.msra.mxu1 %v519_v27  ;;  %539 = vmatprep.subr.bf16.mxu0 %v682_v0 }
  0x66   :  { %521 = vmatprep.subr.bf16.mxu1 %v682_v0 }
  0x68   :  { %541 = vmatpush3.bf16.msra.mxu0 %v540_v48 }
  0x69   :  { %523 = vmatpush3.bf16.msra.mxu1 %v522_v30  ;;  %542 = vmatprep.subr.bf16.mxu0 %v682_v0 }
  0x6c   :  { %544 = vmatpush3.bf16.msra.mxu0 %v543_v51 }
  0x6d   :  { %545 = vmatprep.subr.bf16.mxu0 %v682_v0 }
  0x70   :  { %547 = vmatpush3.bf16.msra.mxu0 %v546_v59 }
 0x125   :  { %v167_v53 = vpop.f32.mrb[0].mxu0 }
 0x126   :  { %v168_v54 = vadd.f32 %v375_v52, %v167_v53  ;;  %v426_v55 = vpop.f32.mrb[1].mxu0 }
 0x128   :  { %v171_v56 = vmax.f32 %v168_v54, 0.0 }
 0x12a   :  { %460 = vmatmul.mubr.f32.vlgmr.msra.gmra.mrb[0].mxu1 %v171_v56 }
 0x1fd   :  { %v260_v61 = vpop.f32.mrb[0].mxu1 }
 0x1fe   :  { %v261_v62 = vadd.f32 %v378_v60, %v260_v61  ;;  %v461_v63 = vpop.f32.mrb[1].mxu1 }
 0x200   :  { %v264_v0 = vmax.f32 %v261_v62, 0.0 }
 0x202   :  { %495 = vmatmul.mubr.f32.vlgmr.msra.gmra.mrb[2].mxu0 %v264_v0 }
 0x2d5   :  { %v353_v2 = vpop.f32.mrb[2].mxu0 }
 0x2d6   :  { %v354_v3 = vadd.f32 %v379_v1, %v353_v2  ;;  %v496_v4 = vpop.f32.mrb[3].mxu0 }
 0x2d8   :  { %357 = vst [vmem:[#allocation10] sm:$0xff] %v354_v3 }
 0x2d9   :  { %657 = shalt.err (!%p654_p8)
}
 0x2da   :  { %s658_s9 = scalar_lea.hbm %s831_s7, 128 }
 0x2db   :  { %p659_p9 = scmp.ne.s32.totalorder %s831_s7, %s658_s9  ;;  %p662_p10 = scmp.lt.u32.totalorder %s658_s9, %s831_s7 }
 0x2dd   :  { %p664_p11 = pnand %p662_p10, %p659_p9 }
 0x2df   :  { %667 = shalt.err (!%p664_p11)
}
 0x2e0   :  { %367 = dma.vmem_to_hbm [thread:$0]  %s365_s29, 128, %s831_s7, [#allocation4]  }
 0x2e1   :  { %674 = dma.done.wait [#allocation4], 128  }
 0x2e2   :  { %675 = vsyncadd [#allocation4], 4294967168 }
 0x2e3   :  { %371 = vsyncpa [#allocation3], 1 }
 0x2e4   :  { %372 = vsyncpa [#allocation6], 1 }
 0x2e5   :  { %373 = vsyncpa [#allocation9], 1 }
 0x2e6   :  { %374 = vsyncpa [#allocation4], 1 }

</bundles_post_ra>
